<compile_context>
chip_gen: v7x
topology: tpu7x:2x2x1
jax: 0.10.0
libtpu: 0.0.40
codegen_flags: <defaults>
</compile_context>

<pallas_src>
import math

import jax
import jax.numpy as jnp
from jax import lax
from jax.experimental import pallas as pl
from jax.experimental.pallas import tpu as pltpu

EPS = 1e-5

_VMEM = pl.BlockSpec(memory_space=pltpu.MemorySpace.VMEM)


# --------------------------------------------------------------------------
# Shared GRU helpers (gate order [r, z, n], PyTorch convention).
# --------------------------------------------------------------------------
def _fold_bias(bih, bhh, H):
    """b_ih (all gates) + b_hh for the r/z gates only.

    The n-gate hidden bias must remain inside the r * (.) term, so it is NOT
    folded here.  Result shape (1, 3H), added once to the hoisted projection.
    """
    lane = lax.broadcasted_iota(jnp.int32, (1, 3 * H), 1)
    return bih + jnp.where(lane < 2 * H, bhh, 0.0)


def _gru_step(h, gi_t, whh, bhn, H):
    """One recurrence step.  gi_t already contains b_ih + b_hh[r,z].

    whh (H,3H) and bhn (B,H) are values hoisted outside the loop, so the loop
    body is one MXU push + VPU gate math only.
    """
    gh = jnp.dot(h, whh, preferred_element_type=jnp.float32)          # (B, 3H)
    r = jax.nn.sigmoid(gi_t[:, :H] + gh[:, :H])
    z = jax.nn.sigmoid(gi_t[:, H:2 * H] + gh[:, H:2 * H])
    n = jnp.tanh(gi_t[:, 2 * H:] + r * (gh[:, 2 * H:] + bhn))
    return (1.0 - z) * n + z * h


# --------------------------------------------------------------------------
# Kernel 1: RevIN normalization (stats + affine).
# TODO(synk): at scale, tile over batch and emit x_norm time-major directly.
# --------------------------------------------------------------------------
def revin_norm_kernel(x_ref, w_ref, b_ref, xn_ref, mean_ref, std_ref):
    x = x_ref[...]                                        # (B, T, F)
    mean = jnp.mean(x, axis=1, keepdims=True)             # (B, 1, F)
    var = jnp.mean((x - mean) ** 2, axis=1, keepdims=True)
    std = jnp.sqrt(var + EPS)
    xn = (x - mean) / std
    xn_ref[...] = xn * w_ref[...] + b_ref[...]
    mean_ref[...] = mean
    std_ref[...] = std


def revin_norm(x, w, b):
    B, T, F = x.shape
    return pl.pallas_call(
        revin_norm_kernel,
        out_shape=(jax.ShapeDtypeStruct((B, T, F), jnp.float32),
                   jax.ShapeDtypeStruct((B, 1, F), jnp.float32),
                   jax.ShapeDtypeStruct((B, 1, F), jnp.float32)),
        in_specs=[_VMEM, _VMEM, _VMEM],
        out_specs=(_VMEM, _VMEM, _VMEM),
    )(x, w, b)


# --------------------------------------------------------------------------
# Kernel 2: bidirectional context GRU + fused (mu, std, z) head + reparam.
# TODO(synk): on v7x split fwd/bwd directions across the 2 TensorCores.
# --------------------------------------------------------------------------
def bigru_ctx_kernel(x_ref, eps_ref,
                     wih_f, whh_f, bih_f, bhh_f,
                     wih_b, whh_b, bih_b, bhh_b,
                     whead_ref, bhead_ref,
                     mu_ref, std_ref, z_ref):
    T, B, F = x_ref.shape
    H = whh_f.shape[0]
    C = mu_ref.shape[-1]
    x2d = x_ref[...].reshape(T * B, F)

    def hoist(wih_r, bih_r, bhh_r):
        bhh = bhh_r[...]
        bias = _fold_bias(bih_r[...], bhh, H)                         # (1, 3H)
        gi = (jnp.dot(x2d, wih_r[...], preferred_element_type=jnp.float32)
              + bias).reshape(T, B, 3 * H)
        bhn = jnp.broadcast_to(bhh[:, 2 * H:], (B, H))                # once, not per step
        return gi, bhn

    gi_fw, bhn_fw = hoist(wih_f, bih_f, bhh_f)
    gi_bw, bhn_bw = hoist(wih_b, bih_b, bhh_b)
    w_fw = whh_f[...]
    w_bw = whh_b[...]

    def step(t, carry):
        h_fw, h_bw = carry
        h_fw = _gru_step(h_fw, gi_fw[t], w_fw, bhn_fw, H)
        h_bw = _gru_step(h_bw, gi_bw[T - 1 - t], w_bw, bhn_bw, H)
        return (h_fw, h_bw)

    h0 = jnp.zeros((B, H), jnp.float32)
    # TODO(synk): for scaled T use partial unroll (e.g. 8) to bound vreg pressure.
    h_fw, h_bw = lax.fori_loop(0, T, step, (h0, h0), unroll=True)

    # context head on the final hidden states: [h_fw; h_bw] @ W  -> (B, 2C)
    y = (jnp.dot(h_fw, whead_ref[0], preferred_element_type=jnp.float32)
         + jnp.dot(h_bw, whead_ref[1], preferred_element_type=jnp.float32)
         + bhead_ref[...])
    mu = y[:, :C]
    std = jnp.exp(0.5 * y[:, C:])
    mu_ref[...] = mu
    std_ref[...] = std
    z_ref[...] = mu + std * eps_ref[...]        # fused reparameterization


# --------------------------------------------------------------------------
# Kernel 3: local posterior GRU + prior GRU, fused heads + reparam, 1 launch.
# TODO(synk): at scale, apply the heads in T-chunks to shrink the h scratch
#             and add batch tiling / vmem_limit_bytes for v7x's 64 MiB VMEM.
# --------------------------------------------------------------------------
def local_prior_kernel(x_ref, ctxz_ref, eps_ref,
                       wihx_l, wihc_l, whh_l, bih_l, bhh_l, whead_l, bhead_l,
                       wih_p, whh_p, bih_p, bhh_p, whead_p, bhead_p,
                       loc_mu_ref, loc_std_ref, loc_z_ref,
                       pri_mu_ref, pri_std_ref,
                       hloc_scr, hpri_scr):
    T, B, F = x_ref.shape
    H = whh_l.shape[0]
    L = loc_mu_ref.shape[-1]

    # ---- local posterior GRU over [x_t ; ctx_z] ------------------------------
    x2d = x_ref[...].reshape(T * B, F)
    bhhL = bhh_l[...]
    biasL = _fold_bias(bih_l[...], bhhL, H)                           # (1, 3H)
    gi_x = jnp.dot(x2d, wihx_l[...], preferred_element_type=jnp.float32)
    gi_c = jnp.dot(ctxz_ref[...], wihc_l[...], preferred_element_type=jnp.float32)
    # ctx contribution broadcast over T without materializing ctx_rep / concat.
    gi_loc = gi_x.reshape(T, B, 3 * H) + (gi_c + biasL)[None]
    bhnL = jnp.broadcast_to(bhhL[:, 2 * H:], (B, H))
    wL = whh_l[...]

    def loc_step(t, h):
        h = _gru_step(h, gi_loc[t], wL, bhnL, H)
        hloc_scr[t] = h
        return h

    lax.fori_loop(0, T, loc_step, jnp.zeros((B, H), jnp.float32), unroll=True)

    # batched (mu || logvar) head + fused reparameterization
    h_all = hloc_scr[...].reshape(T * B, H)
    y = (jnp.dot(h_all, whead_l[...], preferred_element_type=jnp.float32)
         + bhead_l[...]).reshape(T, B, 2 * L)
    loc_mu = y[..., :L]
    loc_std = jnp.exp(0.5 * y[..., L:])
    loc_z = loc_mu + loc_std * eps_ref[...]
    loc_mu_ref[...] = loc_mu
    loc_std_ref[...] = loc_std
    loc_z_ref[...] = loc_z

    # ---- autoregressive prior GRU over z_{<t} (shift handled in-kernel) ------
    bhhP = bhh_p[...]
    biasP = _fold_bias(bih_p[...], bhhP, H)                           # (1, 3H)
    bias_pb = jnp.broadcast_to(biasP, (B, 3 * H))                     # gi for z_{-1}=0
    gi_pri = jnp.dot(loc_z.reshape(T * B, L), wih_p[...],
                     preferred_element_type=jnp.float32).reshape(T, B, 3 * H)
    bhnP = jnp.broadcast_to(bhhP[:, 2 * H:], (B, H))
    wP = whh_p[...]

    def pri_step(t, h):
        keep = (t > 0).astype(jnp.float32)                  # 0 at t=0 (zero input)
        gi_t = bias_pb + keep * gi_pri[jnp.maximum(t - 1, 0)]
        h = _gru_step(h, gi_t, wP, bhnP, H)
        hpri_scr[t] = h
        return h

    lax.fori_loop(0, T, pri_step, jnp.zeros((B, H), jnp.float32), unroll=True)

    h_all_p = hpri_scr[...].reshape(T * B, H)
    yp = (jnp.dot(h_all_p, whead_p[...], preferred_element_type=jnp.float32)
          + bhead_p[...]).reshape(T, B, 2 * L)
    pri_mu_ref[...] = yp[..., :L]
    pri_std_ref[...] = jnp.exp(0.5 * yp[..., L:])


# --------------------------------------------------------------------------
# Kernel 4: fused spatial-decoder MLP + RevIN de-normalization.
# First-layer weight split over [loc_z | ctx_z] so z is never materialized.
# TODO(synk): at scale, grid over rows (256-512 row tiles, 'parallel').
# --------------------------------------------------------------------------
def decoder_denorm_kernel(locz_ref, ctxz_ref, mean_ref, std_ref, rw_ref, rb_ref,
                          w1l_ref, w1c_ref, b1_ref, *refs):
    o_ref = refs[-1]
    wb = refs[:-1]                                           # remaining (w, b) pairs
    T, B, L = locz_ref.shape
    F = o_ref.shape[-1]

    h = jnp.dot(locz_ref[...].reshape(T * B, L), w1l_ref[...],
                preferred_element_type=jnp.float32)                   # (T*B, Hs)
    hc = (jnp.dot(ctxz_ref[...], w1c_ref[...],
                  preferred_element_type=jnp.float32) + b1_ref[...])  # (B, Hs)
    h = jnp.maximum(h.reshape(T, B, -1) + hc[None], 0.0)
    h = h.reshape(T * B, -1)
    n_rest = len(wb) // 2
    for i in range(n_rest):
        h = (jnp.dot(h, wb[2 * i][...], preferred_element_type=jnp.float32)
             + wb[2 * i + 1][...])
        if i < n_rest - 1:
            h = jnp.maximum(h, 0.0)
            # TODO(synk): dropout omitted (eval-mode identity).
    x_hat = h.reshape(T, B, F)

    # fused RevIN de-normalization (time-major; host transposes to (B,T,F)).
    mean = mean_ref[...].reshape(B, F)[None]                 # (1, B, F)
    std = std_ref[...].reshape(B, F)[None]
    x_hat = (x_hat - rb_ref[...]) / (rw_ref[...] + EPS * EPS)
    o_ref[...] = x_hat * std + mean


# --------------------------------------------------------------------------
# Wrappers
# --------------------------------------------------------------------------
def temporal_stage(params, x_norm_t, rng):
    T, B, _ = x_norm_t.shape
    C = params["ctx_head"]["b"].shape[-1] // 2
    L = params["loc_head"]["b"].shape[-1] // 2
    Ht = params["gru_loc"]["whh"].shape[0]
    k_ctx, k_loc = jax.random.split(rng)
    eps_ctx = jax.random.normal(k_ctx, (B, C), jnp.float32)
    eps_loc = jax.random.normal(k_loc, (T, B, L), jnp.float32)

    ctx_mu, ctx_std, ctx_z = pl.pallas_call(
        bigru_ctx_kernel,
        out_shape=(jax.ShapeDtypeStruct((B, C), jnp.float32),) * 3,
        in_specs=[_VMEM] * 12,
        out_specs=(_VMEM,) * 3,
    )(x_norm_t, eps_ctx,
      params["gru_fwd"]["wih"], params["gru_fwd"]["whh"],
      params["gru_fwd"]["bih"], params["gru_fwd"]["bhh"],
      params["gru_bwd"]["wih"], params["gru_bwd"]["whh"],
      params["gru_bwd"]["bih"], params["gru_bwd"]["bhh"],
      params["ctx_head"]["w"], params["ctx_head"]["b"])

    loc_mu, loc_std, loc_z, pri_mu, pri_std = pl.pallas_call(
        local_prior_kernel,
        out_shape=(jax.ShapeDtypeStruct((T, B, L), jnp.float32),) * 5,
        in_specs=[_VMEM] * 16,
        out_specs=(_VMEM,) * 5,
        scratch_shapes=[pltpu.VMEM((T, B, Ht), jnp.float32),
                        pltpu.VMEM((T, B, Ht), jnp.float32)],
    )(x_norm_t, ctx_z, eps_loc,
      params["gru_loc"]["wih_x"], params["gru_loc"]["wih_c"],
      params["gru_loc"]["whh"], params["gru_loc"]["bih"], params["gru_loc"]["bhh"],
      params["loc_head"]["w"], params["loc_head"]["b"],
      params["gru_pri"]["wih"], params["gru_pri"]["whh"],
      params["gru_pri"]["bih"], params["gru_pri"]["bhh"],
      params["pri_head"]["w"], params["pri_head"]["b"])

    return (ctx_mu, ctx_std), (loc_mu, loc_std), (pri_mu, pri_std), ctx_z, loc_z


def decode_denorm(params, loc_z, ctx_z, mean, std):
    T, B, _ = loc_z.shape
    F = params["revin_w"].shape[-1]
    dec = params["decoder"]
    rest = []
    for lyr in dec["rest"]:
        rest += [lyr["w"], lyr["b"]]
    return pl.pallas_call(
        decoder_denorm_kernel,
        out_shape=jax.ShapeDtypeStruct((T, B, F), jnp.float32),
        in_specs=[_VMEM] * (9 + len(rest)),
        out_specs=_VMEM,
    )(loc_z, ctx_z, mean, std, params["revin_w"], params["revin_b"],
      dec["w1_l"], dec["w1_c"], dec["b1"], *rest)


# --------------------------------------------------------------------------
# Parameter initialization (deterministic, PyTorch-default-style uniform)
# --------------------------------------------------------------------------
def _uniform(key, shape, bound):
    return jax.random.uniform(key, shape, jnp.float32, -bound, bound)


def init_linear(key, din, dout):
    k1, k2 = jax.random.split(key)
    b = 1.0 / math.sqrt(din)
    return {"w": _uniform(k1, (din, dout), b), "b": _uniform(k2, (1, dout), b)}


def init_gru(key, din, h):
    ks = jax.random.split(key, 4)
    b = 1.0 / math.sqrt(h)
    return {"wih": _uniform(ks[0], (din, 3 * h), b),
            "whh": _uniform(ks[1], (h, 3 * h), b),
            "bih": _uniform(ks[2], (1, 3 * h), b),
            "bhh": _uniform(ks[3], (1, 3 * h), b)}


def init_gru_split(key, din_x, din_c, h):
    ks = jax.random.split(key, 5)
    b = 1.0 / math.sqrt(h)
    return {"wih_x": _uniform(ks[0], (din_x, 3 * h), b),
            "wih_c": _uniform(ks[1], (din_c, 3 * h), b),
            "whh": _uniform(ks[2], (h, 3 * h), b),
            "bih": _uniform(ks[3], (1, 3 * h), b),
            "bhh": _uniform(ks[4], (1, 3 * h), b)}


def init_dsvae(key, cfg):
    F = cfg["input_size"]; L = cfg["local_size"]; C = cfg["context_size"]
    Hs = cfg["spatial_hidden_size"]; Ht = cfg["temporal_hidden_size"]
    nl = cfg["num_layers"]
    keys = iter(jax.random.split(key, 32))
    p = {}
    # RevIN affine (weight=1, bias=0)
    p["revin_w"] = jnp.ones((1, 1, F), jnp.float32)
    p["revin_b"] = jnp.zeros((1, 1, F), jnp.float32)
    # temporal encoder
    p["gru_fwd"] = init_gru(next(keys), F, Ht)
    p["gru_bwd"] = init_gru(next(keys), F, Ht)
    kb = 1.0 / math.sqrt(2 * Ht)
    kc1, kc2 = jax.random.split(next(keys))
    p["ctx_head"] = {"w": _uniform(kc1, (2, Ht, 2 * C), kb),    # mu || logvar
                     "b": _uniform(kc2, (1, 2 * C), kb)}
    p["gru_loc"] = init_gru_split(next(keys), F, C, Ht)
    p["loc_head"] = init_linear(next(keys), Ht, 2 * L)          # mu || logvar
    p["gru_pri"] = init_gru(next(keys), L, Ht)
    p["pri_head"] = init_linear(next(keys), Ht, 2 * L)          # mu || logvar
    # spatial decoder MLP: (L+C) -> Hs -> [Hs]*(nl-1) -> F (first layer split)
    kd1, kd2, kd3 = jax.random.split(next(keys), 3)
    b1 = 1.0 / math.sqrt(L + C)
    dec = {"w1_l": _uniform(kd1, (L, Hs), b1),
           "w1_c": _uniform(kd2, (C, Hs), b1),
           "b1": _uniform(kd3, (1, Hs), b1),
           "rest": []}
    for _ in range(nl - 1):
        dec["rest"].append(init_linear(next(keys), Hs, Hs))
    dec["rest"].append(init_linear(next(keys), Hs, F))
    p["decoder"] = dec
    return p


# --------------------------------------------------------------------------
# Model forward (glue around the 4 Pallas kernels)
# --------------------------------------------------------------------------
def dsvae_forward(params, x, rng):
    """x: (B, T, F) float32.  Returns dict mirroring the PyTorch module."""
    x_norm, mean, std = revin_norm(x, params["revin_w"], params["revin_b"])
    # TODO(synk): fold both layout transposes into the kernel stores at scale.
    x_norm_t = jnp.transpose(x_norm, (1, 0, 2))                       # (T,B,F)
    context_dist, local_dist, prior_dist, ctx_z, loc_z = temporal_stage(
        params, x_norm_t, rng)
    x_hat_t = decode_denorm(params, loc_z, ctx_z, mean, std)          # (T,B,F)
    x_hat = jnp.transpose(x_hat_t, (1, 0, 2))                         # (B,T,F)
    return {"context_dist": context_dist, "local_dist": local_dist,
            "prior_dist": prior_dist, "x_hat": x_hat, "x_orig": x}


# --------------------------------------------------------------------------
if __name__ == "__main__":
    cfg = dict(input_size=6, local_size=4, context_size=3, window_size=8,
               num_layers=2, spatial_hidden_size=32, temporal_hidden_size=16,
               dropout=0.1)
    B, T, F = 2, cfg["window_size"], cfg["input_size"]

    root = jax.random.PRNGKey(0)
    k_x, k_params, k_sample = jax.random.split(root, 3)
    x = jax.random.normal(k_x, (B, T, F), jnp.float32)
    params = init_dsvae(k_params, cfg)

    out = dsvae_forward(params, x, k_sample)
    jax.block_until_ready(out["x_hat"])

    assert out["x_hat"].shape == (B, T, F)
    assert out["context_dist"][0].shape == (B, cfg["context_size"])
    assert out["local_dist"][0].shape == (T, B, cfg["local_size"])
    assert out["prior_dist"][0].shape == (T, B, cfg["local_size"])
    assert bool(jnp.all(jnp.isfinite(out["x_hat"])))
    print("KERNEL_OK")
</pallas_src>

<mosaic_0001>
module attributes {stable_mosaic.version = 11 : i64} {
  func.func @revin_norm_kernel(%arg0: memref<2x8x6xf32, #tpu.memory_space<vmem>>, %arg1: memref<1x1x6xf32, #tpu.memory_space<vmem>>, %arg2: memref<1x1x6xf32, #tpu.memory_space<vmem>>, %arg3: memref<2x8x6xf32, #tpu.memory_space<vmem>>, %arg4: memref<2x1x6xf32, #tpu.memory_space<vmem>>, %arg5: memref<2x1x6xf32, #tpu.memory_space<vmem>>) attributes {dimension_semantics = [], scalar_prefetch = 0 : i64, scratch_operands = 0 : i64, tpu.core_type = #tpu.core_type<tc>} {
    %c0 = arith.constant 0 : index
    %c0_0 = arith.constant 0 : index
    %c0_1 = arith.constant 0 : index
    %0 = vector.load %arg0[%c0, %c0_0, %c0_1] : memref<2x8x6xf32, #tpu.memory_space<vmem>>, vector<2x8x6xf32>
    %cst = arith.constant dense<0.000000e+00> : vector<2x6xf32>
    %1 = vector.multi_reduction <add>, %0, %cst [1] : vector<2x8x6xf32> to vector<2x6xf32>
    %2 = vector.shape_cast %1 : vector<2x6xf32> to vector<2x1x6xf32>
    %cst_2 = arith.constant 8.000000e+00 : f32
    %3 = vector.broadcast %cst_2 : f32 to vector<2x1x6xf32>
    %4 = arith.divf %2, %3 : vector<2x1x6xf32>
    %5 = vector.broadcast %4 : vector<2x1x6xf32> to vector<2x8x6xf32>
    %6 = arith.subf %0, %5 : vector<2x8x6xf32>
    %7 = arith.mulf %6, %6 : vector<2x8x6xf32>
    %cst_3 = arith.constant dense<0.000000e+00> : vector<2x6xf32>
    %8 = vector.multi_reduction <add>, %7, %cst_3 [1] : vector<2x8x6xf32> to vector<2x6xf32>
    %9 = vector.shape_cast %8 : vector<2x6xf32> to vector<2x1x6xf32>
    %cst_4 = arith.constant 8.000000e+00 : f32
    %10 = vector.broadcast %cst_4 : f32 to vector<2x1x6xf32>
    %11 = arith.divf %9, %10 : vector<2x1x6xf32>
    %cst_5 = arith.constant 9.99999974E-6 : f32
    %12 = vector.broadcast %cst_5 : f32 to vector<2x1x6xf32>
    %13 = arith.addf %11, %12 : vector<2x1x6xf32>
    %14 = math.sqrt %13 : vector<2x1x6xf32>
    %15 = vector.broadcast %4 : vector<2x1x6xf32> to vector<2x8x6xf32>
    %16 = arith.subf %0, %15 : vector<2x8x6xf32>
    %17 = vector.broadcast %14 : vector<2x1x6xf32> to vector<2x8x6xf32>
    %18 = arith.divf %16, %17 : vector<2x8x6xf32>
    %c0_6 = arith.constant 0 : index
    %c0_7 = arith.constant 0 : index
    %c0_8 = arith.constant 0 : index
    %19 = vector.load %arg1[%c0_6, %c0_7, %c0_8] : memref<1x1x6xf32, #tpu.memory_space<vmem>>, vector<1x1x6xf32>
    %20 = vector.broadcast %19 : vector<1x1x6xf32> to vector<2x8x6xf32>
    %21 = arith.mulf %18, %20 : vector<2x8x6xf32>
    %c0_9 = arith.constant 0 : index
    %c0_10 = arith.constant 0 : index
    %c0_11 = arith.constant 0 : index
    %22 = vector.load %arg2[%c0_9, %c0_10, %c0_11] : memref<1x1x6xf32, #tpu.memory_space<vmem>>, vector<1x1x6xf32>
    %23 = vector.broadcast %22 : vector<1x1x6xf32> to vector<2x8x6xf32>
    %24 = arith.addf %21, %23 : vector<2x8x6xf32>
    %c0_12 = arith.constant 0 : index
    %c0_13 = arith.constant 0 : index
    %c0_14 = arith.constant 0 : index
    %25 = vector.load %arg3[%c0_12, %c0_13, %c0_14] : memref<2x8x6xf32, #tpu.memory_space<vmem>>, vector<2x8x6xf32>
    tpu.vector_store %arg3[%c0_12, %c0_13, %c0_14], %24 {strides = array<i32>} : memref<2x8x6xf32, #tpu.memory_space<vmem>>, vector<2x8x6xf32>,
    %c0_15 = arith.constant 0 : index
    %c0_16 = arith.constant 0 : index
    %c0_17 = arith.constant 0 : index
    %26 = vector.load %arg4[%c0_15, %c0_16, %c0_17] : memref<2x1x6xf32, #tpu.memory_space<vmem>>, vector<2x1x6xf32>
    tpu.vector_store %arg4[%c0_15, %c0_16, %c0_17], %4 {strides = array<i32>} : memref<2x1x6xf32, #tpu.memory_space<vmem>>, vector<2x1x6xf32>,
    %c0_18 = arith.constant 0 : index
    %c0_19 = arith.constant 0 : index
    %c0_20 = arith.constant 0 : index
    %27 = vector.load %arg5[%c0_18, %c0_19, %c0_20] : memref<2x1x6xf32, #tpu.memory_space<vmem>>, vector<2x1x6xf32>
    tpu.vector_store %arg5[%c0_18, %c0_19, %c0_20], %14 {strides = array<i32>} : memref<2x1x6xf32, #tpu.memory_space<vmem>>, vector<2x1x6xf32>,
    return
  }
}

</mosaic_0001>

<bundles_post_ra>
// kernel: tpu_custom_call.1
= control target key start
LH: loop header
LB: loop body
LE: loop exit
PB: predicated region body
PF: predicated region fallthrough
CT: control target
= control target key end

     0   :  { %11 = vsyncpa [#allocation3], 0  ;;  %vm21_vm0 = vcmask 48128   ;;  %s304_s0 = inlined_call_operand.vmem [shape: f32[2,8,6], index: 0, kind: input, shape index: {}]   ;;  %s305_s1 = inlined_call_operand.vmem [shape: f32[1,1,6], index: 1, kind: input, shape index: {}]   ;;  %s306_s2 = inlined_call_operand.vmem [shape: f32[1,1,6], index: 2, kind: input, shape index: {}]   ;;  %s307_s3 = inlined_call_operand.vmem [shape: f32[2,8,6], index: 3, kind: output, shape index: {0}]   ;;  %s308_s4 = inlined_call_operand.hbm [shape: f32[2,1,6], index: 4, kind: output, shape index: {1}]   ;;  %s309_s5 = inlined_call_operand.hbm [shape: f32[2,1,6], index: 5, kind: output, shape index: {2}]  }
   0x1   :  { %v19_v0 = vld [vmem:[%s304_s0] sm:$0xff]  ;;  %v20_v1 = vld [vmem:[%s304_s0 + $0x8] sm:$0xff] }
   0x2   :  { %v22_v2 = vsel %vm21_vm0, %v19_v0, 0.0  ;;  %v29_v3 = vsel %vm21_vm0, %v20_v1, 0.0 }
   0x3   :  { %v23_v4 = vrot.slane %v22_v2, 4  ;;  %v30_v5 = vrot.slane %v29_v3, 4 }
   0x4   :  { %12 = vsyncpa [#allocation5], 0  ;;  %s202_s22 = smov [#allocation2]   ;;  %vm99_vm1 = vcmask 40960  }
   0x5   :  { %v24_v6 = vadd.f32 %v23_v4, %v22_v2  ;;  %v31_v7 = vadd.f32 %v30_v5, %v29_v3  ;;  %s111_s23 = sshll.u32 %s202_s22, 4  ;;  %s112_s23 = int_to_ptr.vmem [resolvable:$true] %s111_s23 }
   0x6   :  { %s154_s0 = scalar_lea.vmem %s112_s23, 32  ;;  %p159_p1 = scmp.lt.s32.totalorder %s112_s23, %s112_s23 }
   0x7   :  { %v25_v8 = vrot.slane %v24_v6, 2  ;;  %v32_v9 = vrot.slane %v31_v7, 2  ;;  %p155_p0 = scmp.ne.s32.totalorder %s112_s23, %s154_s0  ;;  %p160_p2 = scmp.lt.s32.totalorder %s154_s0, %s154_s0 }
   0x9   :  { %v26_v10 = vadd.f32 %v25_v8, %v24_v6  ;;  %v33_v11 = vadd.f32 %v32_v9, %v31_v7  ;;  %p161_p3 = por %p160_p2, %p159_p1 }
   0xb   :  { %v27_v12 = vrot.slane %v26_v10, 1  ;;  %v34_v13 = vrot.slane %v33_v11, 1  ;;  %p162_p4 = pnand %p161_p3, %p155_p0 }
   0xd   :  { %v28_v14 = vadd.f32 %v27_v12, %v26_v10  ;;  %v35_v15 = vadd.f32 %v34_v13, %v33_v11 }
   0xf   :  { %v37_v16 = vmul.f32 0.125, %v28_v14  ;;  %v38_v17 = vmul.f32 0.125, %v35_v15 }
  0x11   :  { %v244_v18 = vsub.f32 %v19_v0, %v37_v16  ;;  %100 = vst.msk [vmem:[#allocation2] sm:$0x1] %vm99_vm1, %v37_v16  ;;  %v247_v19 = vsub.f32 %v20_v1, %v38_v17  ;;  %101 = vst.msk [vmem:[#allocation2 + $0x1] sm:$0x1] %vm99_vm1, %v38_v17 }
  0x12   :  { %165 = shalt.err (!%p162_p4)
}
  0x13   :  { %s166_s26 = scalar_lea.hbm %s308_s4, 32 }
  0x14   :  { %p167_p5 = scmp.ne.s32.totalorder %s308_s4, %s166_s26  ;;  %p170_p6 = scmp.lt.u32.totalorder %s166_s26, %s308_s4 }
  0x16   :  { %p172_p7 = pnand %p170_p6, %p167_p5 }
  0x18   :  { %175 = shalt.err (!%p172_p7)
}
  0x19   :  { %s203_s6 = smov 16   ;;  %s204_s7 = smov 1   ;;  %v41_v20 = vmul.f32 %v244_v18, %v244_v18  ;;  %v42_v21 = vmul.f32 %v247_v19, %v247_v19 }
  0x1a   :  { %117 = dma.vmem_to_hbm [thread:$0]  %s112_s23, 32, %s308_s4, [#allocation3], %s203_s6, %s203_s6, %s204_s7  }
  0x1b   :  { %v43_v22 = vsel %vm21_vm0, %v41_v20, 0.0  ;;  %v50_v23 = vsel %vm21_vm0, %v42_v21, 0.0  ;;  %s205_s4 = smov [#allocation4]  }
  0x1c   :  { %v44_v24 = vrot.slane %v43_v22, 4  ;;  %v51_v25 = vrot.slane %v50_v23, 4  ;;  %s123_s10 = sshll.u32 %s205_s4, 4  ;;  %s124_s10 = int_to_ptr.vmem [resolvable:$true] %s123_s10 }
  0x1d   :  { %s176_s11 = scalar_lea.vmem %s124_s10, 32  ;;  %p181_p9 = scmp.lt.s32.totalorder %s124_s10, %s124_s10 }
  0x1e   :  { %v45_v26 = vadd.f32 %v44_v24, %v43_v22  ;;  %v52_v27 = vadd.f32 %v51_v25, %v50_v23  ;;  %p177_p8 = scmp.ne.s32.totalorder %s124_s10, %s176_s11  ;;  %p182_p10 = scmp.lt.s32.totalorder %s176_s11, %s176_s11 }
  0x20   :  { %v46_v28 = vrot.slane %v45_v26, 2  ;;  %v53_v29 = vrot.slane %v52_v27, 2  ;;  %p183_p11 = por %p182_p10, %p181_p9 }
  0x22   :  { %v47_v30 = vadd.f32 %v46_v28, %v45_v26  ;;  %v54_v31 = vadd.f32 %v53_v29, %v52_v27  ;;  %p184_p12 = pnand %p183_p11, %p177_p8 }
  0x24   :  { %v48_v32 = vrot.slane %v47_v30, 1  ;;  %v55_v33 = vrot.slane %v54_v31, 1 }
  0x26   :  { %v49_v34 = vadd.f32 %v48_v32, %v47_v30  ;;  %v56_v35 = vadd.f32 %v55_v33, %v54_v31 }
  0x28   :  { %v57_v36 = vmul.f32 0.125, %v49_v34  ;;  %v58_v37 = vmul.f32 0.125, %v56_v35 }
  0x2a   :  { %v59_v38 = vadd.f32 1e-05, %v57_v36  ;;  %v60_v39 = vadd.f32 1e-05, %v58_v37 }
  0x2c   :  { %146 = vrsqrt.f32 %v59_v38  ;;  %vm63_vm2 = vcmp.eq.f32.partialorder %v59_v38, inf  ;;  %v66_v41 = vand.u32 2147483648, %v59_v38  ;;  %vm65_vm3 = vcmp.eq.f32.partialorder %v59_v38, 0.0 }
  0x2d   :  { %148 = vrsqrt.f32 %v60_v39  ;;  %vm70_vm4 = vcmp.eq.f32.partialorder %v60_v39, inf  ;;  %v73_v44 = vand.u32 2147483648, %v60_v39  ;;  %vm72_vm5 = vcmp.eq.f32.partialorder %v60_v39, 0.0 }
  0x36   :  { %v147_v40 = vpop.eup %146 }
  0x37   :  { %v149_v42 = vpop.eup %148  ;;  %v62_v43 = vmul.f32 %v147_v40, %v59_v38 }
  0x38   :  { %v69_v45 = vmul.f32 %v149_v42, %v60_v39 }
  0x39   :  { %v64_v46 = vsel %vm63_vm2, %v59_v38, %v62_v43 }
  0x3a   :  { %v67_v47 = vsel %vm65_vm3, %v66_v41, %v64_v46  ;;  %v71_v48 = vsel %vm70_vm4, %v60_v39, %v69_v45 }
  0x3b   :  { %150 = vrcp.f32 %v67_v47  ;;  %102 = vst.msk [vmem:[#allocation4] sm:$0x1] %vm99_vm1, %v67_v47  ;;  %v74_v49 = vsel %vm72_vm5, %v73_v44, %v71_v48 }
  0x3c   :  { %152 = vrcp.f32 %v74_v49  ;;  %103 = vst.msk [vmem:[#allocation4 + $0x1] sm:$0x1] %vm99_vm1, %v74_v49 }
  0x3d   :  { %187 = shalt.err (!%p184_p12)
}
  0x3e   :  { %s188_s14 = scalar_lea.hbm %s309_s5, 32 }
  0x3f   :  { %p189_p13 = scmp.ne.s32.totalorder %s309_s5, %s188_s14  ;;  %p192_p0 = scmp.lt.u32.totalorder %s188_s14, %s309_s5 }
  0x41   :  { %p194_p1 = pnand %p192_p0, %p189_p13 }
  0x43   :  { %197 = shalt.err (!%p194_p1)
}
  0x44   :  { %129 = dma.vmem_to_hbm [thread:$0]  %s124_s10, 32, %s309_s5, [#allocation5], %s203_s6, %s203_s6, %s204_s7  }
  0x45   :  { %v151_v50 = vpop.eup %150  ;;  %v140_v51 = vld [vmem:[%s305_s1] ss:$0 sm:$0xff] }
  0x46   :  { %v153_v52 = vpop.eup %152  ;;  %v76_v53 = vmul.f32 %v151_v50, %v244_v18  ;;  %v141_v54 = vld [vmem:[%s306_s2] ss:$0 sm:$0xff] }
  0x47   :  { %v78_v55 = vmul.f32 %v153_v52, %v247_v19 }
  0x48   :  { %v86_v56 = vmul.f32 %v140_v51, %v76_v53 }
  0x49   :  { %v87_v57 = vmul.f32 %v140_v51, %v78_v55 }
  0x4a   :  { %v95_v58 = vadd.f32 %v141_v54, %v86_v56 }
  0x4b   :  { %v96_v59 = vadd.f32 %v141_v54, %v87_v57 }
  0x4c   :  { %97 = vst.msk [vmem:[%s307_s3] sm:$0xff] %vm21_vm0, %v95_v58 }
  0x4d   :  { %98 = vst.msk [vmem:[%s307_s3 + $0x8] sm:$0xff] %vm21_vm0, %v96_v59 }
  0x4e   :  { %198 = dma.done.wait [#allocation3], 32  }
  0x4f   :  { %199 = vsyncadd [#allocation3], 4294967264 }
  0x50   :  { %200 = dma.done.wait [#allocation5], 32  }
  0x51   :  { %201 = vsyncadd [#allocation5], 4294967264 }
  0x52   :  { %138 = vsyncpa [#allocation3], 1 }
  0x53   :  { %139 = vsyncpa [#allocation5], 1 }

</bundles_post_ra>
